<compile_context>
chip_gen: v6e
topology: v6e:2x2x1
jax: 0.10.0
libtpu: 0.0.40
codegen_flags: <defaults>
</compile_context>

<pallas_src>
import jax
import jax.numpy as jnp
from jax.experimental import pallas as pl
from jax.experimental.pallas import tpu as pltpu


def _round_up(x, m):
    return ((x + m - 1) // m) * m


def _vmem_capacity_bytes():
    # Generation-aware VMEM ceiling; fall back to the smallest (v7x: 64 MiB/TC).
    try:
        return int(pltpu.get_tpu_info().vmem_capacity_bytes)
    except Exception:
        return 64 * 1024 * 1024


def _lr_kernel(x_ref, w_ref, b_ref, o_ref):
    # x_ref: (TILE_B, D) activations tile, native dtype (streamed, dbl-buffered)
    # w_ref: (1, D)      lane-dense weight row in x.dtype (resident)
    # b_ref: (1,)        f32 bias scalar in SMEM
    # o_ref: (1, 1, TILE_B) lane-dense output slab for this batch tile
    #
    # (1, D) contracted with (TILE_B, D) on D -> (1, TILE_B): MXU matvec whose
    # result is already lane-major, so the store is a full-width vst.
    # No per-tile upcast: accumulate in f32 via preferred_element_type.
    z = jax.lax.dot_general(
        w_ref[...], x_ref[...],
        dimension_numbers=(((1,), (1,)), ((), ())),
        preferred_element_type=jnp.float32,
    )
    y = jax.nn.sigmoid(z + b_ref[0])                  # (1, TILE_B) f32
    o_ref[...] = y.reshape(o_ref.shape).astype(o_ref.dtype)


def logistic_regression_forward(x, weight, bias, *, tile_b=None):
    """sigmoid(x @ weight.T + bias), matching PyTorchLogisticRegression.forward.

    x:      (B, D) float array (f32 or bf16; dtype preserved through the DMA).
    weight: (1, D) or (D,) float array (nn.Linear(input_dim, 1) layout).
    bias:   (1,) or scalar float.
    Returns a (B, 1) array with the same dtype as x.
    """
    B, D = x.shape
    # Pre-cast the tiny weight row once in the wrapper (no per-step VALU cast).
    w_row = jnp.asarray(weight).reshape(1, D).astype(x.dtype)
    b_vec = jnp.asarray(bias).reshape(1).astype(jnp.float32)

    itemsize = jnp.dtype(x.dtype).itemsize
    bytes_per_row = D * itemsize

    if tile_b is None:
        # Largest batch tile with ~8 MiB per pipeline buffer.
        tile_b = max(128, (8 * 1024 * 1024) // max(bytes_per_row, 1))
    tile_b = max(128, (tile_b // 128) * 128)        # lane-dense output slabs
    tile_b = min(tile_b, _round_up(B, 128))         # never bigger than batch
    if B > 128:
        # Guarantee >= 2 grid tiles so both v7x TensorCores get work.
        tile_b = min(tile_b, _round_up(pl.cdiv(B, 2), 128))

    grid = pl.cdiv(B, tile_b)                       # partial last block is OK

    # Double-buffered x tiles + (double-buffered) weight + tiny output slabs.
    vmem_needed = (2 * tile_b * bytes_per_row
                   + 2 * D * itemsize
                   + 2 * tile_b * itemsize)
    vmem_cap = int(0.75 * _vmem_capacity_bytes())
    vmem_limit = int(min(max(32 * 1024 * 1024, vmem_needed + (2 << 20)),
                         vmem_cap))

    out = pl.pallas_call(
        _lr_kernel,
        out_shape=jax.ShapeDtypeStruct((grid, 1, tile_b), x.dtype),
        grid_spec=pltpu.PrefetchScalarGridSpec(
            num_scalar_prefetch=0,
            grid=(grid,),
            in_specs=[
                # Streamed batch tiles (auto double-buffered by Pallas);
                # the last block may be partial -- garbage rows are sliced off.
                pl.BlockSpec((tile_b, D), lambda i: (i, 0)),
                # Weight row: constant block index -> fetched once, resident.
                pl.BlockSpec((1, D), lambda i: (0, 0)),
                # Bias scalar lives in SMEM.
                pl.BlockSpec(memory_space=pltpu.MemorySpace.SMEM),
            ],
            out_specs=pl.BlockSpec((1, 1, tile_b), lambda i: (i, 0, 0)),
        ),
        compiler_params=pltpu.CompilerParams(
            # Independent batch tiles: shard across both TensorCores on v7x.
            dimension_semantics=("parallel",),
            vmem_limit_bytes=vmem_limit,
        ),
    )(x, w_row, b_vec)

    return out.reshape(-1)[:B].reshape(B, 1)


if __name__ == "__main__":
    key = jax.random.PRNGKey(0)
    keys = jax.random.split(key, 9)

    # Config 1: aligned shapes, default tile -> two grid steps (B > 128 cap).
    B1, D1 = 512, 256
    bound1 = 1.0 / jnp.sqrt(D1)
    x1 = jax.random.normal(keys[0], (B1, D1), dtype=jnp.float32)
    w1 = jax.random.uniform(keys[1], (1, D1), minval=-bound1, maxval=bound1,
                            dtype=jnp.float32)
    b1 = jax.random.uniform(keys[2], (1,), minval=-bound1, maxval=bound1,
                            dtype=jnp.float32)
    out1 = jax.block_until_ready(logistic_regression_forward(x1, w1, b1))
    ref1 = jax.nn.sigmoid(jnp.sum(x1 * w1, axis=-1, keepdims=True) + b1)
    assert out1.shape == (B1, 1)
    # atol covers default-precision (single bf16 pass) f32 MXU rounding.
    assert jnp.allclose(out1, ref1, atol=2e-3, rtol=0.0), \
        float(jnp.max(jnp.abs(out1 - ref1)))

    # Config 2: ragged batch + forced small tile -> multi-tile grid, no pad,
    # partial last input block handled by Pallas.
    B2, D2 = 300, 128
    bound2 = 1.0 / jnp.sqrt(D2)
    x2 = jax.random.normal(keys[3], (B2, D2), dtype=jnp.float32)
    w2 = jax.random.uniform(keys[4], (1, D2), minval=-bound2, maxval=bound2,
                            dtype=jnp.float32)
    b2 = jax.random.uniform(keys[5], (1,), minval=-bound2, maxval=bound2,
                            dtype=jnp.float32)
    out2 = jax.block_until_ready(
        logistic_regression_forward(x2, w2, b2, tile_b=128))
    ref2 = jax.nn.sigmoid(jnp.sum(x2 * w2, axis=-1, keepdims=True) + b2)
    assert out2.shape == (B2, 1)
    assert jnp.allclose(out2, ref2, atol=2e-3, rtol=0.0), \
        float(jnp.max(jnp.abs(out2 - ref2)))

    # Config 3: bf16 activations stream at native width (no in-kernel upcast),
    # ragged batch (257 rows -> 2 tiles, last one has a single valid row).
    B3, D3 = 257, 256
    bound3 = 1.0 / jnp.sqrt(D3)
    x3 = jax.random.normal(keys[6], (B3, D3), dtype=jnp.float32).astype(
        jnp.bfloat16)
    w3 = jax.random.uniform(keys[7], (1, D3), minval=-bound3, maxval=bound3,
                            dtype=jnp.float32)
    b3 = jax.random.uniform(keys[8], (1,), minval=-bound3, maxval=bound3,
                            dtype=jnp.float32)
    out3 = jax.block_until_ready(logistic_regression_forward(x3, w3, b3))
    ref3 = jax.nn.sigmoid(
        jnp.sum(x3.astype(jnp.float32) * w3, axis=-1, keepdims=True) + b3)
    assert out3.shape == (B3, 1)
    assert out3.dtype == jnp.bfloat16
    assert jnp.allclose(out3.astype(jnp.float32), ref3, atol=1.5e-2, rtol=0.0), \
        float(jnp.max(jnp.abs(out3.astype(jnp.float32) - ref3)))

    print("KERNEL_OK")
</pallas_src>

<mosaic_0001>
module attributes {stable_mosaic.version = 11 : i64} {
  func.func @_lr_kernel(%arg0: i32, %arg1: memref<256x256xf32, #tpu.memory_space<vmem>>, %arg2: memref<1x256xf32, #tpu.memory_space<vmem>>, %arg3: memref<1xf32, #tpu.memory_space<smem>>, %arg4: memref<1x1x256xf32, #tpu.memory_space<vmem>>) attributes {dimension_semantics = [#tpu.dimension_semantics<parallel>], iteration_bounds = array<i64: 2>, scalar_prefetch = 0 : i64, scratch_operands = 0 : i64, tpu.core_type = #tpu.core_type<tc>, window_params = [{transform_indices = @transform_0, window_bounds = array<i64: 256, 256>}, {pipeline_mode = #tpu.pipeline_mode<synchronous>, transform_indices = @transform_1, window_bounds = array<i64: 1, 256>}, {transform_indices = @transform_2, window_bounds = array<i64: 1>}, {transform_indices = @transform_3, window_bounds = array<i64: 1, 1, 256>}]} {
    %c0 = arith.constant 0 : index
    %c0_0 = arith.constant 0 : index
    %0 = vector.load %arg2[%c0, %c0_0] : memref<1x256xf32, #tpu.memory_space<vmem>>, vector<1x256xf32>
    %c0_1 = arith.constant 0 : index
    %c0_2 = arith.constant 0 : index
    %1 = vector.load %arg1[%c0_1, %c0_2] : memref<256x256xf32, #tpu.memory_space<vmem>>, vector<256x256xf32>
    %cst = arith.constant dense<0.000000e+00> : vector<1x256xf32>
    %2 = tpu.matmul %0, %1, %cst {dimension_numbers = #tpu.dot_dimension_numbers<[1], [1], [0], [0], [0, 0, 1, 0], [], []>} : vector<1x256xf32>, vector<256x256xf32>, vector<1x256xf32> -> vector<1x256xf32>
    %c0_3 = arith.constant 0 : index
    %3 = memref.load %arg3[%c0_3] : memref<1xf32, #tpu.memory_space<smem>>
    %4 = vector.broadcast %3 : f32 to vector<1x256xf32>
    %5 = arith.addf %2, %4 : vector<1x256xf32>
    %6 = arith.negf %5 : vector<1x256xf32>
    %7 = math.exp %6 : vector<1x256xf32>
    %cst_4 = arith.constant 1.000000e+00 : f32
    %8 = vector.broadcast %cst_4 : f32 to vector<1x256xf32>
    %9 = arith.addf %8, %7 : vector<1x256xf32>
    %10 = arith.divf %8, %9 : vector<1x256xf32>
    %11 = vector.shape_cast %10 : vector<1x256xf32> to vector<1x1x256xf32>
    %c0_5 = arith.constant 0 : index
    %c0_6 = arith.constant 0 : index
    %c0_7 = arith.constant 0 : index
    %12 = vector.load %arg4[%c0_5, %c0_6, %c0_7] : memref<1x1x256xf32, #tpu.memory_space<vmem>>, vector<1x1x256xf32>
    tpu.vector_store %arg4[%c0_5, %c0_6, %c0_7], %11 {strides = array<i32>} : memref<1x1x256xf32, #tpu.memory_space<vmem>>, vector<1x1x256xf32>,
    return
  }
  func.func @transform_0(%arg0: i32) -> (i32, i32) {
    %c0_i32 = arith.constant 0 : i32
    %c0_i32_0 = arith.constant 0 : i32
    return %arg0, %c0_i32 : i32, i32
  }
  func.func @transform_1(%arg0: i32) -> (i32, i32) {
    %c0_i32 = arith.constant 0 : i32
    %c0_i32_0 = arith.constant 0 : i32
    %c0_i32_1 = arith.constant 0 : i32
    return %c0_i32, %c0_i32_0 : i32, i32
  }
  func.func @transform_2(%arg0: i32) -> i32 {
    %c0_i32 = arith.constant 0 : i32
    %c0_i32_0 = arith.constant 0 : i32
    return %c0_i32 : i32
  }
  func.func @transform_3(%arg0: i32) -> (i32, i32, i32) {
    %c0_i32 = arith.constant 0 : i32
    %c0_i32_0 = arith.constant 0 : i32
    %c0_i32_1 = arith.constant 0 : i32
    return %arg0, %c0_i32, %c0_i32_0 : i32, i32, i32
  }
}

</mosaic_0001>

<bundles_post_ra>
// kernel: tpu_custom_call.1
= control target key start
LH: loop header
LB: loop body
LE: loop exit
PB: predicated region body
PF: predicated region fallthrough
CT: control target
= control target key end

     0   :  { %s880_s0 = inlined_call_operand.hbm [shape: f32[512,256], index: 0, kind: input, shape index: {}]   ;;  %s881_s1 = inlined_call_operand.vmem [shape: f32[1,256], index: 1, kind: input, shape index: {}]   ;;  %s882_s2 = inlined_call_operand.<no memory space> [shape: f32[1], index: 2, kind: input, shape index: {}]   ;;  %s883_s3 = inlined_call_operand.hbm [shape: f32[2,1,256], index: 3, kind: output, shape index: {}]  }
   0x1   :  { %8 = sst [smem:[#allocation2]] %s882_s2 }
   0x2   :  { %9 = vsyncpa [#allocation4], 0 }
   0x3   :  { %11 = vsyncpa [#allocation4 + $0x1], 0 }
   0x4   :  { %12 = vsyncpa [#allocation5], 0 }
   0x5   :  { %14 = vsyncpa [#allocation5 + $0x1], 0  ;;  %s660_s14 = smov 0   ;;  %s662_s15 = smov 0  }
   0x6   :  { %s664_s16 = smov 0   ;;  %s666_s17 = smov 0  }
   0x7 LB: > { %s681_s2 = sadd.s32 4294967295, %s630_s17   ;;  %s461_s18 = sadd.s32 4294967294, %s630_s17   ;;  %s630_s17 = sphi %s666_s17, %s898_s17   ;;  %s626_s16 = sphi %s664_s16, %s897_s16   ;;  %s622_s15 = sphi %s662_s15, %s896_s15   ;;  %s618_s14 = sphi %s660_s14, %s895_s14  }
   0x8   : > { %s685_s19 = sadd.s32 1, %s630_s17   ;;  %s27_s20 = sadd.s32 1, %s626_s16 }
   0x9   : > { %s24_s21 = ssub.s32 %s630_s17, %s685_s19  ;;  %p34_p0 = scmp.ne.s32.totalorder %s626_s16, %s622_s15 }
   0xa   : > { %p25_p1 = scmp.eq.s32.totalorder %s24_s21, 0  ;;  %p35_p2 = scmp.eq.s32.totalorder %s630_s17, 0 }
   0xb   : > { %p40_p3 = scmp.ne.s32.totalorder %s622_s15, %s618_s14  ;;  %p41_p4 = scmp.eq.s32.totalorder %s681_s2, 0 }
   0xc   : > { %s697_s22 = scalar_select %p25_p1, %s626_s16, %s27_s20  }
   0xd   : > { %p699_p5 = por %p35_p2, %p34_p0  ;;  %p703_p6 = por %p41_p4, %p40_p3 }
   0xe   : > { %p106_p7 = scmp.eq.s32.totalorder %s681_s2, 1  ;;  %p112_p8 = scmp.eq.s32.totalorder %s461_s18, 1 }
   0xf   : > { %s887_s24 = scalar_select %p703_p6, 1, 0 }
  0x10   : > { %p493_p10 = scmp.lt.s32.totalorder %s630_s17, 2  ;;  %p710_p11 = por %p106_p7, %p34_p0 }
  0x11   : > { %p714_p12 = por %p112_p8, %p40_p3  ;;  %s138_s27 = sand.u32 1, %s626_s16  }
  0x12   : > { %s888_s25 = scalar_select %p710_p11, 1, 0 }
  0x13   : > { %s889_s26 = scalar_select %p714_p12, 1, 0 }
  0x14   : > { %s479_s28 = sshll.u32 %s630_s17, 13  ;;  %s464_s29 = sshll.u32 %s138_s27, 9 }
  0x15   : > { %s723_s5 = scalar_lea.hbm %s880_s0, %s479_s28  ;;  %s142_s6 = scalar_lea.vmem [#allocation3], %s464_s29 }
  0x16   : > { %s150_s7 = sshll.u32 %s142_s6, 4  ;;  %p727_p13 = pnand %p493_p10, %p699_p5  ;;  %s731_s7 = int_to_ptr.vmem [resolvable:$true] %s150_s7 }
  0x17   : > { %s733_s9 = scalar_lea.sflag [#allocation4], %s138_s27  ;;  %s538_s10 = scalar_lea.hbm %s723_s5, 8192 }
  0x18   : > { %p539_p0 = scmp.ne.s32.totalorder %s723_s5, %s538_s10  ;;  %p540_p1 = pneg %p727_p13 }
  0x19   : > { %s543_s13 = scalar_lea.hbm %s880_s0, 16384  ;;  %p544_p4 = scmp.lt.s32.totalorder %s723_s5, %s880_s0 }
  0x1a   : > { %p541_p2 = pnand %p540_p1, %p539_p0  ;;  %p545_p5 = scmp.lt.s32.totalorder %s543_s13, %s538_s10 }
  0x1c   : > { %p542_p3 = pneg %p541_p2  ;;  %p546_p7 = por %p545_p5, %p544_p4 }
  0x1e   : > { %p547_p8 = pnand %p546_p7, %p542_p3 }
  0x20   : > { %550 = shalt.err (!%p547_p8)
}
  0x21   : > { %s551_s21 = scalar_lea.vmem %s731_s7, 8192  ;;  %s632_s23 = smov [#allocation3]  }
  0x22   : > { %p552_p10 = scmp.ne.s32.totalorder %s731_s7, %s551_s21  ;;  %s556_s27 = sshll.u32 %s632_s23, 4  ;;  %s557_s27 = int_to_ptr.vmem [resolvable:$false] %s556_s27 }
  0x23   : > { %s558_s28 = scalar_lea.vmem %s557_s27, 16384  ;;  %p559_p2 = scmp.lt.s32.totalorder %s731_s7, %s557_s27 }
  0x24   : > { %p554_p9 = pnand %p552_p10, %p540_p1  ;;  %p560_p12 = scmp.lt.s32.totalorder %s558_s28, %s551_s21 }
  0x26   : > { %p555_p0 = pneg %p554_p9  ;;  %p561_p11 = por %p560_p12, %p559_p2 }
  0x28   : > { %p562_p6 = pnand %p561_p11, %p555_p0 }
  0x2a   : > { %565 = shalt.err (!%p562_p6)
}
  0x2b   : > { %s633_s29 = smov 256   ;;  %s634_s30 = smov 16  }
  0x2c   : > { %488 = dma.hbm_to_vmem [thread:$0]  (!%p727_p13), %s723_s5, 8192, %s731_s7, %s733_s9, %s633_s29, %s633_s29, %s634_s30  }
  0x2d   : > { %p468_p9 = scmp.ge.s32.totalorder %s630_s17, 1  ;;  %p158_p1 = scmp.lt.s32.totalorder %s630_s17, 3 }
  0x2f   : > { %p159_p3 = pnand %p468_p9, %p158_p1 }
  0x30   : > { %s757_s4 = sand.u32 (!%p159_p3), 1, %s622_s15   ;;  %p891_p6 = scmp.ne.s32.totalorder (!%p159_p3), %s887_s24, 0 }
  0x31   : > { %162 = sbr.rel (%p159_p3) target bundleno = 432 (0x1b0), region = 32  ;;  %s469_s6 = sshll.u32 (!%p159_p3), %s757_s4, 9 }
  0x32   : > { %s165_s10 = scalar_lea.sflag (!%p159_p3), [#allocation4], %s757_s4  ;;  %s761_s11 = scalar_lea.vmem (!%p159_p3), [#allocation3], %s469_s6 }
  0x36   : > { %609 = dma.done.wait (%p891_p6), %s165_s10, 8192  }
  0x37   : > { %611 = vsyncadd (%p891_p6), %s165_s10, 4294959104  ;;  %v224_v0 = vld [vmem:[%s761_s11 + $0xf8] sm:$0xff]  ;;  %v223_v1 = vld [vmem:[%s761_s11 + $0xf0] sm:$0xff]  ;;  %v260_v7 = vlaneseq  ;;  %s257_s7 = sld [smem:[#allocation2]]  ;;  %s470_s8 = sshll.u32 %s757_s4, 1 }
  0x38   : > { %v222_v2 = vld [vmem:[%s761_s11 + $0xe8] sm:$0xff]  ;;  %270 = vmatprep.subr.mxu0 %v224_v0  ;;  %v221_v3 = vld [vmem:[%s761_s11 + $0xe0] sm:$0xff]  ;;  %v220_v4 = vld [vmem:[%s761_s11 + $0xd8] sm:$0xff]  ;;  %s480_s9 = sshll.u32 %s681_s2, 5  ;;  %s190_s12 = scalar_lea.vmem [#allocation6], %s470_s8 }
  0x39   : > { %271 = vmatpush1.xpose.msra.mxu0 %v223_v1  ;;  %v219_v5 = vld [vmem:[%s761_s11 + $0xd0] sm:$0xff]  ;;  %v218_v6 = vld [vmem:[%s761_s11 + $0xc8] sm:$0xff]  ;;  %v217_v8 = vld [vmem:[%s761_s11 + $0xc0] sm:$0xff]  ;;  %v777_v10 = vshrl.u32 %v260_v7, 7  ;;  %s391_s13 = sshll.u32 %s190_s12, 4  ;;  %vm373_vm0 = vcmp.lt.s32.totalorder %v260_v7, 256  ;;  %s389_s21 = scalar_lea.hbm %s883_s3, %s480_s9  ;;  %s392_s13 = int_to_ptr.vmem [resolvable:$true] %s391_s13 }
  0x3a   : > { %272 = vmatprep.subr.mxu0 %v222_v2  ;;  %v216_v9 = vld [vmem:[%s761_s11 + $0xb8] sm:$0xff]  ;;  %v215_v11 = vld [vmem:[%s761_s11 + $0xb0] sm:$0xff]  ;;  %v214_v12 = vld [vmem:[%s761_s11 + $0xa8] sm:$0xff]  ;;  %s377_s23 = scalar_lea.sflag [#allocation5], %s757_s4  ;;  %s566_s27 = scalar_lea.vmem %s392_s13, 32 }
  0x3b   : > { %v262_v13 = vsub.s32 0, %v777_v10  ;;  %v266_v14 = vsub.s32 1, %v777_v10  ;;  %v213_v15 = vld [vmem:[%s761_s11 + $0xa0] sm:$0xff]  ;;  %v212_v16 = vld [vmem:[%s761_s11 + $0x98] sm:$0xff]  ;;  %v211_v20 = vld [vmem:[%s761_s11 + $0x90] sm:$0xff]  ;;  %p567_p11 = scmp.ne.s32.totalorder %s392_s13, %s566_s27  ;;  %p892_p12 = scmp.ne.s32.totalorder %s888_s25, 0 }
  0x3c   : > { %v192_v17 = vld [vmem:[%s881_s1] sm:$0x3]  ;;  %v210_v21 = vld [vmem:[%s761_s11 + $0x88] sm:$0xff]  ;;  %v208_v23 = vld [vmem:[%s761_s11 + $0x78] sm:$0xff]  ;;  %s636_s28 = smov [#allocation6]  }
  0x3d   : > { %273 = vmatpush1.xpose.msra.mxu0 %v221_v3  ;;  %v788_v18 = vrot.slane %v192_v17, %v262_v13  ;;  %v267_v19 = vrot.slane %v192_v17, %v266_v14  ;;  %v209_v22 = vld [vmem:[%s761_s11 + $0x80] sm:$0xff]  ;;  %v207_v24 = vld [vmem:[%s761_s11 + $0x70] sm:$0xff]  ;;  %v206_v25 = vld [vmem:[%s761_s11 + $0x68] sm:$0xff]  ;;  %p568_p13 = pnand %p567_p11, %p892_p12  ;;  %s570_s2 = sshll.u32 %s636_s28, 4  ;;  %s571_s2 = int_to_ptr.vmem [resolvable:$false] %s570_s2 }
  0x3e   : > { %274 = vmatprep.subr.mxu0 %v220_v4  ;;  %v205_v26 = vld [vmem:[%s761_s11 + $0x60] sm:$0xff]  ;;  %v204_v27 = vld [vmem:[%s761_s11 + $0x58] sm:$0xff]  ;;  %v203_v28 = vld [vmem:[%s761_s11 + $0x50] sm:$0xff]  ;;  %s572_s29 = scalar_lea.vmem %s571_s2, 64  ;;  %p573_p5 = scmp.lt.s32.totalorder %s392_s13, %s571_s2 }
  0x3f   : > { %334 = vmatprep.mubr.f32.mxu0 %v267_v19  ;;  %v202_v29 = vld [vmem:[%s761_s11 + $0x48] sm:$0xff]  ;;  %v201_v30 = vld [vmem:[%s761_s11 + $0x40] sm:$0xff]  ;;  %v200_v31 = vld [vmem:[%s761_s11 + $0x38] sm:$0xff]  ;;  %p569_p4 = pneg %p568_p13  ;;  %p574_p7 = scmp.lt.s32.totalorder %s572_s29, %s566_s27 }
  0x40   : > { %v199_v32 = vld [vmem:[%s761_s11 + $0x30] sm:$0xff]  ;;  %v198_v33 = vld [vmem:[%s761_s11 + $0x28] sm:$0xff]  ;;  %v197_v34 = vld [vmem:[%s761_s11 + $0x20] sm:$0xff] }
  0x41   : > { %275 = vmatpush1.xpose.msra.mxu0 %v219_v5  ;;  %v196_v35 = vld [vmem:[%s761_s11 + $0x18] sm:$0xff]  ;;  %v195_v36 = vld [vmem:[%s761_s11 + $0x10] sm:$0xff]  ;;  %v194_v37 = vld [vmem:[%s761_s11 + $0x8] sm:$0xff]  ;;  %p575_p8 = por %p574_p7, %p573_p5 }
  0x42   : > { %276 = vmatprep.subr.mxu0 %v218_v6  ;;  %v193_v38 = vld [vmem:[%s761_s11] sm:$0xff]  ;;  %v256_v39 = vld [vmem:[%s761_s11 + $0x1f8] sm:$0xff]  ;;  %v255_v40 = vld [vmem:[%s761_s11 + $0x1f0] sm:$0xff] }
  0x43   : > { %v254_v41 = vld [vmem:[%s761_s11 + $0x1e8] sm:$0xff]  ;;  %v253_v42 = vld [vmem:[%s761_s11 + $0x1e0] sm:$0xff]  ;;  %v252_v43 = vld [vmem:[%s761_s11 + $0x1d8] sm:$0xff]  ;;  %p576_p10 = pnand %p575_p8, %p569_p4 }
  0x44   : > { %v251_v44 = vld [vmem:[%s761_s11 + $0x1d0] sm:$0xff]  ;;  %v250_v45 = vld [vmem:[%s761_s11 + $0x1c8] sm:$0xff]  ;;  %v249_v46 = vld [vmem:[%s761_s11 + $0x1c0] sm:$0xff] }
  0x45   : > { %277 = vmatpush1.xpose.msra.mxu0 %v217_v8  ;;  %v248_v47 = vld [vmem:[%s761_s11 + $0x1b8] sm:$0xff]  ;;  %v247_v48 = vld [vmem:[%s761_s11 + $0x1b0] sm:$0xff]  ;;  %v246_v49 = vld [vmem:[%s761_s11 + $0x1a8] sm:$0xff]  ;;  %v258_v8 = vstv %s257_s7 }
  0x46   : > { %278 = vmatprep.subr.mxu0 %v216_v9  ;;  %v245_v50 = vld [vmem:[%s761_s11 + $0x1a0] sm:$0xff]  ;;  %v244_v51 = vld [vmem:[%s761_s11 + $0x198] sm:$0xff]  ;;  %v243_v52 = vld [vmem:[%s761_s11 + $0x190] sm:$0xff] }
  0x47   : > { %v242_v53 = vld [vmem:[%s761_s11 + $0x188] sm:$0xff]  ;;  %v241_v54 = vld [vmem:[%s761_s11 + $0x180] sm:$0xff]  ;;  %v240_v55 = vld [vmem:[%s761_s11 + $0x178] sm:$0xff] }
  0x48   : > { %v239_v56 = vld [vmem:[%s761_s11 + $0x170] sm:$0xff]  ;;  %v238_v57 = vld [vmem:[%s761_s11 + $0x168] sm:$0xff]  ;;  %v237_v58 = vld [vmem:[%s761_s11 + $0x160] sm:$0xff] }
  0x49   : > { %279 = vmatpush1.xpose.msra.mxu0 %v215_v11  ;;  %v236_v59 = vld [vmem:[%s761_s11 + $0x158] sm:$0xff]  ;;  %v235_v60 = vld [vmem:[%s761_s11 + $0x150] sm:$0xff]  ;;  %v234_v61 = vld [vmem:[%s761_s11 + $0x148] sm:$0xff] }
  0x4a   : > { %280 = vmatprep.subr.mxu0 %v214_v12  ;;  %v233_v62 = vld [vmem:[%s761_s11 + $0x140] sm:$0xff]  ;;  %v232_v63 = vld [vmem:[%s761_s11 + $0x138] sm:$0xff]  ;;  %v231_v0 = vld [vmem:[%s761_s11 + $0x130] sm:$0xff] }
  0x4b   : > { %v230_v1 = vld [vmem:[%s761_s11 + $0x128] sm:$0xff]  ;;  %v229_v2 = vld [vmem:[%s761_s11 + $0x120] sm:$0xff]  ;;  %v228_v3 = vld [vmem:[%s761_s11 + $0x118] sm:$0xff] }
  0x4c   : > { %v227_v4 = vld [vmem:[%s761_s11 + $0x110] sm:$0xff]  ;;  %v226_v5 = vld [vmem:[%s761_s11 + $0x108] sm:$0xff]  ;;  %v225_v6 = vld [vmem:[%s761_s11 + $0x100] sm:$0xff] }
  0x4d   : > { %281 = vmatpush1.xpose.msra.mxu0 %v213_v15 }
  0x4e   : > { %282 = vmatprep.subr.mxu0 %v212_v16 }
  0x51   : > { %283 = vmatpush1.xpose.msra.mxu0 %v211_v20 }
  0x52   : > { %284 = vmatprep.subr.mxu0 %v210_v21  ;;  %v635_v21 = vmov 1966171168  }
  0x55   : > { %285 = vmatpush1.xpose.msra.mxu0 %v209_v22 }
  0x56   : > { %286 = vmatprep.subr.mxu0 %v208_v23 }
  0x59   : > { %287 = vmatpush1.xpose.msra.mxu0 %v207_v24 }
  0x5a   : > { %288 = vmatprep.subr.mxu0 %v206_v25 }
  0x5d   : > { %289 = vmatpush1.xpose.msra.mxu0 %v205_v26 }
  0x5e   : > { %290 = vmatprep.subr.mxu0 %v204_v27 }
  0x61   : > { %291 = vmatpush1.xpose.msra.mxu0 %v203_v28 }
  0x62   : > { %292 = vmatprep.subr.mxu0 %v202_v29 }
  0x65   : > { %293 = vmatpush1.xpose.msra.mxu0 %v201_v30 }
  0x66   : > { %294 = vmatprep.subr.mxu0 %v200_v31 }
  0x69   : > { %295 = vmatpush1.xpose.msra.mxu0 %v199_v32 }
  0x6a   : > { %296 = vmatprep.subr.mxu0 %v198_v33 }
  0x6d   : > { %297 = vmatpush1.xpose.msra.mxu0 %v197_v34 }
  0x6e   : > { %298 = vmatprep.subr.mxu0 %v196_v35 }
  0x71   : > { %299 = vmatpush1.xpose.msra.mxu0 %v195_v36 }
  0x72   : > { %300 = vmatprep.subr.mxu0 %v194_v37 }
  0x75   : > { %301 = vmatpush1.xpose.msra.mxu0 %v193_v38 }
  0x76   : > { %302 = vmatprep.subr.mxu0 %v256_v39 }
  0x79   : > { %303 = vmatpush2.xpose.msra.mxu0 %v255_v40 }
  0x7a   : > { %304 = vmatprep.subr.mxu0 %v254_v41 }
  0x7d   : > { %305 = vmatpush2.xpose.msra.mxu0 %v253_v42 }
  0x7e   : > { %306 = vmatprep.subr.mxu0 %v252_v43 }
  0x81   : > { %307 = vmatpush2.xpose.msra.mxu0 %v251_v44 }
  0x82   : > { %308 = vmatprep.subr.mxu0 %v250_v45 }
  0x85   : > { %309 = vmatpush2.xpose.msra.mxu0 %v249_v46 }
  0x86   : > { %310 = vmatprep.subr.mxu0 %v248_v47 }
  0x89   : > { %311 = vmatpush2.xpose.msra.mxu0 %v247_v48 }
  0x8a   : > { %312 = vmatprep.subr.mxu0 %v246_v49 }
  0x8d   : > { %313 = vmatpush2.xpose.msra.mxu0 %v245_v50 }
  0x8e   : > { %314 = vmatprep.subr.mxu0 %v244_v51 }
  0x91   : > { %315 = vmatpush2.xpose.msra.mxu0 %v243_v52 }
  0x92   : > { %316 = vmatprep.subr.mxu0 %v242_v53 }
  0x95   : > { %317 = vmatpush2.xpose.msra.mxu0 %v241_v54 }
  0x96   : > { %318 = vmatprep.subr.mxu0 %v240_v55 }
  0x99   : > { %319 = vmatpush2.xpose.msra.mxu0 %v239_v56 }
  0x9a   : > { %320 = vmatprep.subr.mxu0 %v238_v57 }
  0x9d   : > { %321 = vmatpush2.xpose.msra.mxu0 %v237_v58 }
  0x9e   : > { %322 = vmatprep.subr.mxu0 %v236_v59 }
  0xa1   : > { %323 = vmatpush2.xpose.msra.mxu0 %v235_v60 }
  0xa2   : > { %324 = vmatprep.subr.mxu0 %v234_v61 }
  0xa5   : > { %325 = vmatpush2.xpose.msra.mxu0 %v233_v62 }
  0xa6   : > { %326 = vmatprep.subr.mxu0 %v232_v63 }
  0xa9   : > { %327 = vmatpush2.xpose.msra.mxu0 %v231_v0 }
  0xaa   : > { %328 = vmatprep.subr.mxu0 %v230_v1 }
  0xad   : > { %329 = vmatpush2.xpose.msra.mxu0 %v229_v2 }
  0xae   : > { %330 = vmatprep.subr.mxu0 %v228_v3 }
  0xb1   : > { %331 = vmatpush2.xpose.msra.mxu0 %v227_v4 }
  0xb2   : > { %332 = vmatprep.subr.mxu0 %v226_v5 }
  0xb5   : > { %333 = vmatpush2.xpose.msra.mxu0 %v225_v6 }
  0xb8   : > { %335 = vmatmul.mubr.f32.vlgmr.msra.gmra.mxu0 %v788_v18  ;;  %v357_v18 = vunpack.c.l.s4 %v635_v21 }
  0xba   : > { %v358_v22 = vunpack.c.0.s8 %v357_v18 }
  0xbc   : > { %v361_v24 = vsub.s32 %v358_v22, %v777_v10 }
 0x178   : > { %v336_v9 = vpop.f32.mrf.mxu0 }
 0x179   : > { %v337_v11 = vadd.f32 %v336_v9, %v258_v8 }
 0x17a   : > { %v338_v12 = vpop.f32.mrf.mxu0 }
 0x17b   : > { %v471_v13 = vmul.f32 -1.442695, %v337_v11  ;;  %v339_v14 = vadd.f32 %v338_v12, %v258_v8 }
 0x17d   : > { %530 = vpow2.f32 %v471_v13  ;;  %v472_v15 = vmul.f32 -1.442695, %v339_v14 }
 0x17f   : > { %532 = vpow2.f32 %v472_v15 }
 0x18a   : > { %v531_v16 = vpop.eup %530 }
 0x18b   : > { %v347_v17 = vadd.f32 1.0, %v531_v16 }
 0x18c   : > { %v533_v19 = vpop.eup %532 }
 0x18d   : > { %v348_v20 = vadd.f32 1.0, %v533_v19  ;;  %534 = vrcp.f32 %v347_v17 }
 0x18f   : > { %536 = vrcp.f32 %v348_v20 }
 0x19a   : > { %v535_v23 = vpop.eup %534 }
 0x19c   : > { %v537_v25 = vpop.eup %536 }
 0x19d   : > { %v355_v26 = vcombine.low %v535_v23, %v537_v25 }
 0x19f   : > { %v362_v27 = vrot.slane %v355_v26, %v361_v24 }
 0x1a1   : > { %v369_v28 = vrot.slane %v362_v27, %v361_v24 }
 0x1a3   : > { %375 = vst.msk [vmem:[%s190_s12] sm:$0x3] %vm373_vm0, %v369_v28 }
 0x1a4   : > { %579 = shalt.err (!%p576_p10)
}
 0x1a5   : > { %s580_s30 = scalar_lea.hbm %s389_s21, 32  ;;  %s584_s10 = scalar_lea.hbm %s883_s3, 64 }
 0x1a6   : > { %p581_p0 = scmp.ne.s32.totalorder %s389_s21, %s580_s30  ;;  %p585_p1 = scmp.lt.s32.totalorder %s389_s21, %s883_s3 }
 0x1a7   : > { %p586_p3 = scmp.lt.s32.totalorder %s584_s10, %s580_s30 }
 0x1a8   : > { %p582_p2 = pnand %p581_p0, %p892_p12 }
 0x1a9   : > { %p587_p6 = por %p586_p3, %p585_p1 }
 0x1aa   : > { %p583_p9 = pneg %p582_p2 }
 0x1ac   : > { %p588_p11 = pnand %p587_p6, %p583_p9 }
 0x1ae   : > { %591 = shalt.err (!%p588_p11)
}
 0x1af   : > { %483 = dma.vmem_to_hbm [thread:$0]  (%p892_p12), %s392_s13, 32, %s389_s21, %s377_s23  }
 0x1b0 PF: > { %s403_s5 = sand.u32 1, %s618_s14   ;;  %p893_p13 = scmp.ne.s32.totalorder %s889_s26, 0 }
 0x1b1   : > { %p894_p4 = scmp.ge.s32.totalorder %s630_s17, 2  ;;  %s404_s7 = scalar_lea.sflag [#allocation5], %s403_s5 }
 0x1b3   : > { %p490_p5 = pnand %p894_p4, %p893_p13 }
 0x1b5   : > { %p491_p7 = pneg %p490_p5 }
 0x1b7   : > { %613 = dma.done.wait (%p491_p7), %s404_s7, 32  }
 0x1b8   : > { %615 = vsyncadd (%p491_p7), %s404_s7, 4294967264  ;;  %p17_p8 = scmp.ge.s32.totalorder %s685_s19, 4   ;;  %s895_s14 = smov %s622_s15 }
 0x1b9   : > { %s896_s15 = smov %s626_s16  ;;  %s897_s16 = smov %s697_s22 }
 0x1ba   : > { %s898_s17 = smov %s685_s19  ;;  %19 = sbr.rel (!%p17_p8) target bundleno = 7 (0x7), region = 77 }
 0x1bf   :  { %409 = vsyncpa [#allocation4], 1 }
 0x1c0   :  { %411 = vsyncpa [#allocation4 + $0x1], 1 }
 0x1c1   :  { %412 = vsyncpa [#allocation5], 1 }
 0x1c2   :  { %414 = vsyncpa [#allocation5 + $0x1], 1 }

</bundles_post_ra>
